<compile_context>
chip_gen: v6e
topology: v6e:2x2x1
jax: 0.10.0
libtpu: 0.0.40
codegen_flags: <defaults>
</compile_context>

<pallas_src>
import functools
import math

import jax
import jax.numpy as jnp
from jax.experimental import pallas as pl
from jax.experimental.pallas import tpu as pltpu


# Safe across v5e/v6e (128 MiB physical) and v7x (64 MiB physical per TC).
_VMEM_LIMIT = 48 * 1024 * 1024
_DEFAULT_BLOCK_ROWS = 512        # large tiles: memory-bound kernels want this


def _round_up(n, m):
    return ((n + m - 1) // m) * m


# -----------------------------------------------------------------------------
# Kernel 1: row-tiled linear   out = x @ w + b      (QKV projection)
# -----------------------------------------------------------------------------
def _linear_kernel(x_ref, w_ref, b_ref, o_ref):
    x = x_ref[...].astype(jnp.float32)                         # (tm, K)
    w = w_ref[...].astype(jnp.float32)                         # (K, M)
    b = b_ref[...].astype(jnp.float32)                         # (1, M)
    acc = jnp.dot(x, w, preferred_element_type=jnp.float32) + b
    o_ref[...] = acc.astype(o_ref.dtype)


def linear_pallas(x, w, b, *, block_rows=_DEFAULT_BLOCK_ROWS):
    # TODO(synk): K (=dim) is kept untiled; for dim >~ 2048 a K-tiled
    # accumulator variant would be needed to bound the weight VMEM block.
    N, K = x.shape
    Kw, M = w.shape
    assert K == Kw
    tm = min(block_rows, _round_up(N, 8))
    Np = _round_up(N, tm)
    xp = jnp.pad(x, ((0, Np - N), (0, 0))) if Np != N else x

    out = pl.pallas_call(
        _linear_kernel,
        out_shape=jax.ShapeDtypeStruct((Np, M), x.dtype),
        grid_spec=pltpu.PrefetchScalarGridSpec(
            num_scalar_prefetch=0,
            grid=(Np // tm,),
            in_specs=[
                pl.BlockSpec((tm, K), lambda i: (i, 0)),
                pl.BlockSpec((K, M), lambda i: (0, 0)),
                pl.BlockSpec((1, M), lambda i: (0, 0)),
            ],
            out_specs=pl.BlockSpec((tm, M), lambda i: (i, 0)),
        ),
        compiler_params=pltpu.CompilerParams(
            dimension_semantics=("parallel",),
            vmem_limit_bytes=_VMEM_LIMIT),
    )(xp, w, b.reshape(1, M))
    return out[:N]


# -----------------------------------------------------------------------------
# Kernel 2: batched attention over groups g = (batch, image-row, head)
#   q,k,v : (gt, W, hd)   ->   att (gt, W, W) pre-softmax,  o (gt, W, hd)
# -----------------------------------------------------------------------------
def _attn_kernel(q_ref, k_ref, v_ref, att_ref, o_ref, *, scale):
    q = q_ref[...].astype(jnp.float32)                         # (gt, W, hd)
    k = k_ref[...].astype(jnp.float32)
    v = v_ref[...].astype(jnp.float32)

    s = jnp.einsum('gqd,gkd->gqk', q, k,
                   preferred_element_type=jnp.float32) * scale  # (gt, W, W)
    att_ref[...] = s.astype(att_ref.dtype)                      # pre-softmax scores

    m = jnp.max(s, axis=-1, keepdims=True)
    p = jnp.exp(s - m)
    l = jnp.sum(p, axis=-1, keepdims=True)
    p = p * pl.reciprocal(l, approx=False)
    # TODO(synk): attn_drop is identity here (inference semantics).

    o = jnp.einsum('gqk,gkd->gqd', p, v,
                   preferred_element_type=jnp.float32)           # (gt, W, hd)
    o_ref[...] = o.astype(o_ref.dtype)


def attention_pallas(q, k, v, scale, *, block_groups=128):
    G, W, hd = q.shape
    gt = min(block_groups, G)
    Gp = _round_up(G, gt)
    if Gp != G:
        pad = ((0, Gp - G), (0, 0), (0, 0))
        q = jnp.pad(q, pad)
        k = jnp.pad(k, pad)
        v = jnp.pad(v, pad)

    att, o = pl.pallas_call(
        functools.partial(_attn_kernel, scale=scale),
        out_shape=(jax.ShapeDtypeStruct((Gp, W, W), q.dtype),
                   jax.ShapeDtypeStruct((Gp, W, hd), q.dtype)),
        grid_spec=pltpu.PrefetchScalarGridSpec(
            num_scalar_prefetch=0,
            grid=(Gp // gt,),
            in_specs=[
                pl.BlockSpec((gt, W, hd), lambda i: (i, 0, 0)),
                pl.BlockSpec((gt, W, hd), lambda i: (i, 0, 0)),
                pl.BlockSpec((gt, W, hd), lambda i: (i, 0, 0)),
            ],
            out_specs=(pl.BlockSpec((gt, W, W), lambda i: (i, 0, 0)),
                       pl.BlockSpec((gt, W, hd), lambda i: (i, 0, 0))),
        ),
        compiler_params=pltpu.CompilerParams(
            dimension_semantics=("parallel",),
            vmem_limit_bytes=_VMEM_LIMIT),
    )(q, k, v)
    return att[:G], o[:G]


# -----------------------------------------------------------------------------
# Kernel 3: Conv1x1 MLP (folded eval-BN) + residual + ReLU, token-major rows
#   out = relu(resid + bn2(conv2(relu(bn1(conv1(t))))))
# -----------------------------------------------------------------------------
def _mlp_res_kernel(t_ref, r_ref, w1_ref, s1_ref, b1_ref,
                    w2_ref, s2_ref, b2_ref, o_ref):
    t = t_ref[...].astype(jnp.float32)                         # (tm, C)
    h = jnp.dot(t, w1_ref[...].astype(jnp.float32),
                preferred_element_type=jnp.float32)            # (tm, Cr)
    h = jnp.maximum(h * s1_ref[...] + b1_ref[...], 0.0)        # bn1 + relu
    y = jnp.dot(h, w2_ref[...].astype(jnp.float32),
                preferred_element_type=jnp.float32)            # (tm, C)
    y = y * s2_ref[...] + b2_ref[...]                          # bn2
    r = r_ref[...].astype(jnp.float32)
    o_ref[...] = jnp.maximum(r + y, 0.0).astype(o_ref.dtype)   # residual + relu


def mlp_residual_pallas(t, resid, w1, s1, b1, w2, s2, b2,
                        *, block_rows=_DEFAULT_BLOCK_ROWS):
    N, C = t.shape
    Cr = w1.shape[1]
    tm = min(block_rows, _round_up(N, 8))
    Np = _round_up(N, tm)
    if Np != N:
        t = jnp.pad(t, ((0, Np - N), (0, 0)))
        resid = jnp.pad(resid, ((0, Np - N), (0, 0)))

    out = pl.pallas_call(
        _mlp_res_kernel,
        out_shape=jax.ShapeDtypeStruct((Np, C), t.dtype),
        grid_spec=pltpu.PrefetchScalarGridSpec(
            num_scalar_prefetch=0,
            grid=(Np // tm,),
            in_specs=[
                pl.BlockSpec((tm, C), lambda i: (i, 0)),
                pl.BlockSpec((tm, C), lambda i: (i, 0)),
                pl.BlockSpec((C, Cr), lambda i: (0, 0)),
                pl.BlockSpec((1, Cr), lambda i: (0, 0)),
                pl.BlockSpec((1, Cr), lambda i: (0, 0)),
                pl.BlockSpec((Cr, C), lambda i: (0, 0)),
                pl.BlockSpec((1, C), lambda i: (0, 0)),
                pl.BlockSpec((1, C), lambda i: (0, 0)),
            ],
            out_specs=pl.BlockSpec((tm, C), lambda i: (i, 0)),
        ),
        compiler_params=pltpu.CompilerParams(
            dimension_semantics=("parallel",),
            vmem_limit_bytes=_VMEM_LIMIT),
    )(t, resid, w1, s1.reshape(1, Cr), b1.reshape(1, Cr),
      w2, s2.reshape(1, C), b2.reshape(1, C))
    return out[:N]


# -----------------------------------------------------------------------------
# Module-like wrapper mirroring the PyTorch WAttention (inference semantics)
# -----------------------------------------------------------------------------
class WAttentionPallas:
    def __init__(self, dim, num_heads=8, qkv_bias=False, qk_scale=None,
                 attn_drop=0.1, proj_drop=0.1, mlp_ratio=4, *,
                 key=None, dtype=jnp.float32):
        assert dim % num_heads == 0, \
            f"dim {dim} should be divided by num_heads {num_heads}."
        self.dim = dim
        self.num_heads = num_heads
        self.head_dim = dim // num_heads
        self.scale = qk_scale or self.head_dim ** (-0.5)
        self.mlp_ratio = mlp_ratio
        self.qkv_bias = qkv_bias
        self.bn_eps = 1e-3
        # TODO(synk): nn.Dropout (attn_drop/proj_drop) and training-mode
        # BatchNorm batch statistics are not implemented; this is the
        # inference (eval) forward pass.

        if key is None:
            key = jax.random.PRNGKey(0)
        ks = jax.random.split(key, 4)
        C, Cr = dim, dim * mlp_ratio

        def init(k, shape, fan_in):
            bound = 1.0 / math.sqrt(fan_in)
            return jax.random.uniform(k, shape, dtype, -bound, bound)

        # PyTorch parameter layouts
        self.w_qkv = init(ks[0], (3 * C, C), C)                 # Linear(dim, 3*dim)
        self.b_qkv = (init(ks[1], (3 * C,), C) if qkv_bias
                      else jnp.zeros((3 * C,), dtype))
        self.w1 = init(ks[2], (Cr, C), C)                       # Conv2d 1x1, no bias
        self.w2 = init(ks[3], (C, Cr), Cr)                      # Conv2d 1x1, no bias
        # BatchNorm2d params + running stats (eval mode)
        self.bn1_w = jnp.ones((Cr,), dtype)
        self.bn1_b = jnp.zeros((Cr,), dtype)
        self.bn1_rm = jnp.zeros((Cr,), dtype)
        self.bn1_rv = jnp.ones((Cr,), dtype)
        self.bn2_w = jnp.ones((C,), dtype)
        self.bn2_b = jnp.zeros((C,), dtype)
        self.bn2_rm = jnp.zeros((C,), dtype)
        self.bn2_rv = jnp.ones((C,), dtype)

    def __call__(self, x):
        B, C, H, W = x.shape
        assert C == self.dim
        nh, hd = self.num_heads, self.head_dim
        N = B * H * W

        # token-major (lane-dense) layout: (B, C, H, W) -> (B*H*W, C)
        tokens = jnp.transpose(x, (0, 2, 3, 1)).reshape(N, C)

        # --- QKV projection ---
        qkv_tok = linear_pallas(tokens, jnp.transpose(self.w_qkv), self.b_qkv)
        qkv = jnp.transpose(qkv_tok.reshape(B, H, W, 3, nh, hd),
                            (3, 0, 1, 4, 2, 5))                 # (3, B, H, nh, W, hd)
        q, k, v = qkv[0], qkv[1], qkv[2]

        # --- attention within each (b, image-row, head) group of W tokens ---
        G = B * H * nh
        att_g, o_g = attention_pallas(q.reshape(G, W, hd),
                                      k.reshape(G, W, hd),
                                      v.reshape(G, W, hd),
                                      float(self.scale))
        att = att_g.reshape(B, H, nh, W, W)
        o_tok = jnp.transpose(o_g.reshape(B, H, nh, W, hd),
                              (0, 1, 3, 2, 4)).reshape(N, C)     # (N, C)

        # --- Conv1x1 MLP with folded eval-mode BN, residual, ReLU ---
        s1 = self.bn1_w / jnp.sqrt(self.bn1_rv + self.bn_eps)
        b1 = self.bn1_b - self.bn1_rm * s1
        s2 = self.bn2_w / jnp.sqrt(self.bn2_rv + self.bn_eps)
        b2 = self.bn2_b - self.bn2_rm * s2
        out_tok = mlp_residual_pallas(o_tok, tokens,
                                      jnp.transpose(self.w1), s1, b1,
                                      jnp.transpose(self.w2), s2, b2)
        out = jnp.transpose(out_tok.reshape(B, H, W, C), (0, 3, 1, 2))
        return out, att, q


# -----------------------------------------------------------------------------
# Pure-JAX reference (eval-mode semantics of the PyTorch module)
# -----------------------------------------------------------------------------
def wattention_ref(x, m):
    B, C, H, W = x.shape
    nh, hd = m.num_heads, m.head_dim
    t = jnp.transpose(x, (0, 2, 3, 1)).reshape(-1, W, C)
    qkv = t @ m.w_qkv.T + m.b_qkv
    qkv = jnp.transpose(qkv.reshape(B, H, W, 3, nh, hd), (3, 0, 1, 4, 2, 5))
    q, k, v = qkv[0], qkv[1], qkv[2]
    attn = jnp.einsum('bhnqd,bhnkd->bhnqk', q, k) * m.scale
    att = attn
    p = jax.nn.softmax(attn, axis=-1)
    o = jnp.einsum('bhnqk,bhnkd->bhnqd', p, v)
    o = jnp.transpose(jnp.transpose(o, (0, 1, 3, 2, 4)).reshape(B, H, W, C),
                      (0, 3, 1, 2))

    def bn(y, w, b, rm, rv):
        inv = w / jnp.sqrt(rv + m.bn_eps)
        return ((y - rm[None, :, None, None]) * inv[None, :, None, None]
                + b[None, :, None, None])

    h = jnp.einsum('oc,bchw->bohw', m.w1, o)
    h = jax.nn.relu(bn(h, m.bn1_w, m.bn1_b, m.bn1_rm, m.bn1_rv))
    y = jnp.einsum('oc,bchw->bohw', m.w2, h)
    y = bn(y, m.bn2_w, m.bn2_b, m.bn2_rm, m.bn2_rv)
    out = jax.nn.relu(x + y)
    return out, att, q


if __name__ == "__main__":
    key = jax.random.PRNGKey(0)
    kparam, kx, kb1, kb2, kb3, kb4 = jax.random.split(key, 6)

    B, C, H, W = 2, 32, 8, 8       # dim=32 divisible by num_heads=8
    num_heads = 8

    mod = WAttentionPallas(C, num_heads=num_heads, key=kparam)
    # non-trivial (deterministic) BatchNorm affine params / running stats
    Cr = C * mod.mlp_ratio
    mod.bn1_w = 1.0 + 0.1 * jax.random.normal(kb1, (Cr,), jnp.float32)
    mod.bn1_b = 0.1 * jax.random.normal(kb2, (Cr,), jnp.float32)
    mod.bn1_rm = 0.1 * jax.random.normal(kb3, (Cr,), jnp.float32)
    mod.bn1_rv = 1.0 + 0.1 * jnp.abs(jax.random.normal(kb4, (Cr,), jnp.float32))

    x = jax.random.normal(kx, (B, C, H, W), jnp.float32)

    out, att, q = mod(x)
    out = jax.block_until_ready(out)
    att = jax.block_until_ready(att)
    q = jax.block_until_ready(q)

    out_ref, att_ref, q_ref = wattention_ref(x, mod)
    assert out.shape == (B, C, H, W)
    assert att.shape == (B, H, num_heads, W, W)
    assert q.shape == (B, H, num_heads, W, C // num_heads)
    assert bool(jnp.allclose(out, out_ref, atol=1e-4, rtol=1e-4))
    assert bool(jnp.allclose(att, att_ref, atol=1e-4, rtol=1e-4))
    assert bool(jnp.allclose(q, q_ref, atol=1e-4, rtol=1e-4))

    print("KERNEL_OK")
</pallas_src>

<mosaic_0001>
module attributes {stable_mosaic.version = 11 : i64} {
  func.func @_linear_kernel(%arg0: i32, %arg1: memref<128x32xf32, #tpu.memory_space<vmem>>, %arg2: memref<32x96xf32, #tpu.memory_space<vmem>>, %arg3: memref<1x96xf32, #tpu.memory_space<vmem>>, %arg4: memref<128x96xf32, #tpu.memory_space<vmem>>) attributes {dimension_semantics = [#tpu.dimension_semantics<parallel>], iteration_bounds = array<i64: 1>, scalar_prefetch = 0 : i64, scratch_operands = 0 : i64, tpu.core_type = #tpu.core_type<tc>, window_params = [{transform_indices = @transform_0, window_bounds = array<i64: 128, 32>}, {pipeline_mode = #tpu.pipeline_mode<synchronous>, transform_indices = @transform_1, window_bounds = array<i64: 32, 96>}, {pipeline_mode = #tpu.pipeline_mode<synchronous>, transform_indices = @transform_2, window_bounds = array<i64: 1, 96>}, {transform_indices = @transform_3, window_bounds = array<i64: 128, 96>}]} {
    %c0 = arith.constant 0 : index
    %c0_0 = arith.constant 0 : index
    %0 = vector.load %arg1[%c0, %c0_0] : memref<128x32xf32, #tpu.memory_space<vmem>>, vector<128x32xf32>
    %c0_1 = arith.constant 0 : index
    %c0_2 = arith.constant 0 : index
    %1 = vector.load %arg2[%c0_1, %c0_2] : memref<32x96xf32, #tpu.memory_space<vmem>>, vector<32x96xf32>
    %c0_3 = arith.constant 0 : index
    %c0_4 = arith.constant 0 : index
    %2 = vector.load %arg3[%c0_3, %c0_4] : memref<1x96xf32, #tpu.memory_space<vmem>>, vector<1x96xf32>
    %cst = arith.constant dense<0.000000e+00> : vector<128x96xf32>
    %3 = tpu.matmul %0, %1, %cst {dimension_numbers = #tpu.dot_dimension_numbers<[1], [0], [0], [1], [0, 0, 1, 1], [], []>} : vector<128x32xf32>, vector<32x96xf32>, vector<128x96xf32> -> vector<128x96xf32>
    %4 = vector.broadcast %2 : vector<1x96xf32> to vector<128x96xf32>
    %5 = arith.addf %3, %4 : vector<128x96xf32>
    %c0_5 = arith.constant 0 : index
    %c0_6 = arith.constant 0 : index
    %6 = vector.load %arg4[%c0_5, %c0_6] : memref<128x96xf32, #tpu.memory_space<vmem>>, vector<128x96xf32>
    tpu.vector_store %arg4[%c0_5, %c0_6], %5 {strides = array<i32>} : memref<128x96xf32, #tpu.memory_space<vmem>>, vector<128x96xf32>,
    return
  }
  func.func @transform_0(%arg0: i32) -> (i32, i32) {
    %c0_i32 = arith.constant 0 : i32
    %c0_i32_0 = arith.constant 0 : i32
    return %arg0, %c0_i32 : i32, i32
  }
  func.func @transform_1(%arg0: i32) -> (i32, i32) {
    %c0_i32 = arith.constant 0 : i32
    %c0_i32_0 = arith.constant 0 : i32
    %c0_i32_1 = arith.constant 0 : i32
    return %c0_i32, %c0_i32_0 : i32, i32
  }
  func.func @transform_2(%arg0: i32) -> (i32, i32) {
    %c0_i32 = arith.constant 0 : i32
    %c0_i32_0 = arith.constant 0 : i32
    %c0_i32_1 = arith.constant 0 : i32
    return %c0_i32, %c0_i32_0 : i32, i32
  }
  func.func @transform_3(%arg0: i32) -> (i32, i32) {
    %c0_i32 = arith.constant 0 : i32
    %c0_i32_0 = arith.constant 0 : i32
    return %arg0, %c0_i32 : i32, i32
  }
}

</mosaic_0001>

<bundles_post_ra>
// kernel: tpu_custom_call.1
= control target key start
LH: loop header
LB: loop body
LE: loop exit
PB: predicated region body
PF: predicated region fallthrough
CT: control target
= control target key end

     0   :  { %vm41_vm0 = vcmask 261120   ;;  %vm235_vm1 = vcmask 785408   ;;  %s496_s1 = inlined_call_operand.vmem [shape: f32[32,96], index: 1, kind: input, shape index: {}]   ;;  %s497_s0 = inlined_call_operand.vmem [shape: f32[128,32], index: 0, kind: input, shape index: {}]   ;;  %s498_s2 = inlined_call_operand.vmem [shape: f32[1,96], index: 2, kind: input, shape index: {}]   ;;  %s499_s3 = inlined_call_operand.vmem [shape: f32[128,96], index: 3, kind: output, shape index: {}]  }
   0x1   :  { %v33_v0 = vld [vmem:[%s496_s1 + $0x18] sm:$0xff]  ;;  %v32_v1 = vld [vmem:[%s496_s1 + $0x10] sm:$0xff]  ;;  %v31_v2 = vld [vmem:[%s496_s1 + $0x8] sm:$0xff] }
   0x2   :  { %293 = vmatprep.subr.mxu0 %v33_v0  ;;  %325 = vmatprep.subr.mxu1 %v33_v0  ;;  %v30_v3 = vld [vmem:[%s496_s1] sm:$0xff]  ;;  %v15_v6 = vld [vmem:[%s497_s0 + $0x8] sm:$0xff]  ;;  %v16_v8 = vld [vmem:[%s497_s0 + $0x10] sm:$0xff] }
   0x3   :  { %294 = vmatpush3.msra.mxu0 %v33_v0  ;;  %329 = vmatpush3.msra.mxu1 %v33_v0  ;;  %v14_v4 = vld [vmem:[%s497_s0] sm:$0xff]  ;;  %v23_v7 = vld [vmem:[%s497_s0 + $0x48] sm:$0xff]  ;;  %v24_v9 = vld [vmem:[%s497_s0 + $0x50] sm:$0xff] }
   0x4   :  { %295 = vmatprep.subr.mxu0 %v32_v1  ;;  %326 = vmatprep.subr.mxu1 %v32_v1  ;;  %v22_v5 = vld [vmem:[%s497_s0 + $0x40] sm:$0xff]  ;;  %v17_v10 = vld [vmem:[%s497_s0 + $0x18] sm:$0xff]  ;;  %v19_v14 = vld [vmem:[%s497_s0 + $0x28] sm:$0xff] }
   0x5   :  { %296 = vmatpush3.msra.mxu0 %v32_v1  ;;  %330 = vmatpush3.msra.mxu1 %v32_v1  ;;  %v25_v11 = vld [vmem:[%s497_s0 + $0x58] sm:$0xff]  ;;  %v18_v12 = vld [vmem:[%s497_s0 + $0x20] sm:$0xff]  ;;  %v27_v15 = vld [vmem:[%s497_s0 + $0x68] sm:$0xff] }
   0x6   :  { %297 = vmatprep.subr.mxu0 %v31_v2  ;;  %327 = vmatprep.subr.mxu1 %v31_v2  ;;  %v26_v13 = vld [vmem:[%s497_s0 + $0x60] sm:$0xff]  ;;  %v20_v16 = vld [vmem:[%s497_s0 + $0x30] sm:$0xff]  ;;  %v21_v18 = vld [vmem:[%s497_s0 + $0x38] sm:$0xff] }
   0x7   :  { %298 = vmatpush3.msra.mxu0 %v31_v2  ;;  %331 = vmatpush3.msra.mxu1 %v31_v2  ;;  %v28_v17 = vld [vmem:[%s497_s0 + $0x70] sm:$0xff]  ;;  %v29_v19 = vld [vmem:[%s497_s0 + $0x78] sm:$0xff]  ;;  %v256_v20 = vld [vmem:[%s498_s2] ss:$0 sm:$0xff] }
   0x8   :  { %299 = vmatprep.subr.mxu0 %v30_v3  ;;  %328 = vmatprep.subr.mxu1 %v30_v3 }
   0x9   :  { %300 = vmatpush3.msra.mxu0 %v30_v3  ;;  %332 = vmatpush3.msra.mxu1 %v30_v3 }
   0xa   :  { %301 = vmatprep.mubr.msk.f32.mxu0 %vm41_vm0, %v14_v4  ;;  %313 = vmatprep.mubr.msk.f32.mxu1 %vm41_vm0, %v22_v5 }
   0xb   :  { %302 = vmatmul.mubr.msk.f32.vlgmr.msra.gmra.mxu0 %vm41_vm0, %v15_v6  ;;  %314 = vmatmul.mubr.msk.f32.vlgmr.msra.gmra.mxu1 %vm41_vm0, %v23_v7 }
   0xc   :  { %304 = vmatprep.mubr.msk.f32.mxu0 %vm41_vm0, %v16_v8  ;;  %316 = vmatprep.mubr.msk.f32.mxu1 %vm41_vm0, %v24_v9 }
   0xf   :  { %305 = vmatmul.mubr.msk.f32.gmra.mxu0 %vm41_vm0, %v17_v10  ;;  %317 = vmatmul.mubr.msk.f32.gmra.mxu1 %vm41_vm0, %v25_v11 }
  0x10   :  { %307 = vmatprep.mubr.msk.f32.mxu0 %vm41_vm0, %v18_v12  ;;  %319 = vmatprep.mubr.msk.f32.mxu1 %vm41_vm0, %v26_v13 }
  0x13   :  { %308 = vmatmul.mubr.msk.f32.gmra.mxu0 %vm41_vm0, %v19_v14  ;;  %320 = vmatmul.mubr.msk.f32.gmra.mxu1 %vm41_vm0, %v27_v15 }
  0x14   :  { %310 = vmatprep.mubr.msk.f32.mxu0 %vm41_vm0, %v20_v16  ;;  %322 = vmatprep.mubr.msk.f32.mxu1 %vm41_vm0, %v28_v17 }
  0x17   :  { %311 = vmatmul.mubr.msk.f32.gmra.mxu0 %vm41_vm0, %v21_v18  ;;  %323 = vmatmul.mubr.msk.f32.gmra.mxu1 %vm41_vm0, %v29_v19 }
  0xcb   :  { %v303_v21 = vpop.f32.mrf.mxu0  ;;  %v315_v22 = vpop.f32.mrf.mxu1 }
  0xcc   :  { %v162_v23 = vadd.f32 %v303_v21, %v256_v20  ;;  %v202_v24 = vadd.f32 %v315_v22, %v256_v20 }
  0xcd   :  { %v156_v25 = vpop.f32.mrf.mxu0  ;;  %v196_v26 = vpop.f32.mrf.mxu1 }
  0xce   :  { %237 = vst.msk [vmem:[%s499_s3 + $0x8] sm:$0xff] %vm235_vm1, %v162_v23  ;;  %245 = vst.msk [vmem:[%s499_s3 + $0x48] sm:$0xff] %vm235_vm1, %v202_v24  ;;  %v157_v27 = vadd.f32 %v256_v20, %v156_v25  ;;  %v197_v28 = vadd.f32 %v256_v20, %v196_v26 }
  0xcf   :  { %v306_v29 = vpop.f32.mrf.mxu0  ;;  %v318_v30 = vpop.f32.mrf.mxu1 }
  0xd0   :  { %236 = vst.msk [vmem:[%s499_s3] sm:$0xff] %vm235_vm1, %v157_v27  ;;  %244 = vst.msk [vmem:[%s499_s3 + $0x40] sm:$0xff] %vm235_vm1, %v197_v28  ;;  %v172_v31 = vadd.f32 %v306_v29, %v256_v20  ;;  %v212_v32 = vadd.f32 %v318_v30, %v256_v20 }
  0xd1   :  { %v166_v33 = vpop.f32.mrf.mxu0  ;;  %v206_v34 = vpop.f32.mrf.mxu1 }
  0xd2   :  { %239 = vst.msk [vmem:[%s499_s3 + $0x18] sm:$0xff] %vm235_vm1, %v172_v31  ;;  %247 = vst.msk [vmem:[%s499_s3 + $0x58] sm:$0xff] %vm235_vm1, %v212_v32  ;;  %v167_v35 = vadd.f32 %v256_v20, %v166_v33  ;;  %v207_v36 = vadd.f32 %v256_v20, %v206_v34 }
  0xd3   :  { %v309_v37 = vpop.f32.mrf.mxu0  ;;  %v321_v38 = vpop.f32.mrf.mxu1 }
  0xd4   :  { %238 = vst.msk [vmem:[%s499_s3 + $0x10] sm:$0xff] %vm235_vm1, %v167_v35  ;;  %246 = vst.msk [vmem:[%s499_s3 + $0x50] sm:$0xff] %vm235_vm1, %v207_v36  ;;  %v182_v39 = vadd.f32 %v309_v37, %v256_v20  ;;  %v222_v40 = vadd.f32 %v321_v38, %v256_v20 }
  0xd5   :  { %v176_v41 = vpop.f32.mrf.mxu0  ;;  %v216_v42 = vpop.f32.mrf.mxu1 }
  0xd6   :  { %241 = vst.msk [vmem:[%s499_s3 + $0x28] sm:$0xff] %vm235_vm1, %v182_v39  ;;  %249 = vst.msk [vmem:[%s499_s3 + $0x68] sm:$0xff] %vm235_vm1, %v222_v40  ;;  %v177_v43 = vadd.f32 %v256_v20, %v176_v41  ;;  %v217_v44 = vadd.f32 %v256_v20, %v216_v42 }
  0xd7   :  { %v312_v45 = vpop.f32.mrf.mxu0  ;;  %v324_v46 = vpop.f32.mrf.mxu1 }
  0xd8   :  { %240 = vst.msk [vmem:[%s499_s3 + $0x20] sm:$0xff] %vm235_vm1, %v177_v43  ;;  %248 = vst.msk [vmem:[%s499_s3 + $0x60] sm:$0xff] %vm235_vm1, %v217_v44  ;;  %v192_v47 = vadd.f32 %v312_v45, %v256_v20  ;;  %v232_v48 = vadd.f32 %v324_v46, %v256_v20 }
  0xd9   :  { %v186_v49 = vpop.f32.mrf.mxu0  ;;  %v226_v50 = vpop.f32.mrf.mxu1 }
  0xda   :  { %243 = vst.msk [vmem:[%s499_s3 + $0x38] sm:$0xff] %vm235_vm1, %v192_v47  ;;  %251 = vst.msk [vmem:[%s499_s3 + $0x78] sm:$0xff] %vm235_vm1, %v232_v48  ;;  %v187_v51 = vadd.f32 %v256_v20, %v186_v49  ;;  %v227_v52 = vadd.f32 %v256_v20, %v226_v50 }
  0xdc   :  { %242 = vst.msk [vmem:[%s499_s3 + $0x30] sm:$0xff] %vm235_vm1, %v187_v51  ;;  %250 = vst.msk [vmem:[%s499_s3 + $0x70] sm:$0xff] %vm235_vm1, %v227_v52 }

</bundles_post_ra>
